<compile_context>
chip_gen: v5e
topology: v5e:2x2
jax: 0.10.0
libtpu: 0.0.40
codegen_flags: <defaults>
</compile_context>

<pallas_src>
import functools

import jax
import jax.numpy as jnp
import numpy as np
from jax.experimental import pallas as pl

_SECTION_ALIGN = 16  # bf16 sublane tile; also a multiple of the f32 tile (8)


def _round_up(x, m):
    return (x + m - 1) // m * m


def _decoder_kernel(x_ref,    # (S*B, F)  time-major flat, compute dtype
                    h0_ref,   # (B, H)    f32
                    w_ref,    # (rows, 3H) packed weights, compute dtype
                    b_ref,    # (3, 3H)   packed biases, f32
                    out_ref,  # (B, F)    f32
                    *, seq_len, batch, n_features, hidden, off_h, off_o):
    F, H = n_features, hidden
    cdt = w_ref.dtype  # matmul operand dtype (bf16 fast path, or f32)

    # ---- One-time static slices of the packed slabs (loop invariant).
    w_i = w_ref[0:F, :]                # (F, 3H) input weights, gates r|z|n
    w_h = w_ref[off_h:off_h + H, :]    # (H, 3H) hidden weights
    w_o = w_ref[off_o:off_o + H, :]    # (H, 3H) head weights (lane-padded)
    b_i = b_ref[0:1, :]                # (1, 3H) b_ih + [b_hh_r|b_hh_z|0] fold
    b_hn = jnp.broadcast_to(b_ref[1:2, 0:H], (batch, H))   # (B, H)
    b_o = b_ref[2:3, 0:F]              # (1, F)

    # ---- Hoisted input projection: ONE MXU matmul for all S steps and all
    # three gates, f32 accumulation, folded biases.
    gi = jnp.dot(x_ref[...], w_i, preferred_element_type=jnp.float32) + b_i
    # gi: (S*B, 3H) f32; row t*B + b belongs to (t, b).

    # ---- Fully unrolled recurrence (seq_len static => static slice offsets).
    # Serial path per step: ONE (B,H)x(H,3H) matmul + f32 VPU/EUP gate math.
    h = h0_ref[...]                                           # (B, H) f32
    for t in range(seq_len):
        lo = t * batch
        gi_t = gi[lo:lo + batch, :]                           # (B, 3H)
        gh = jnp.dot(h.astype(cdt), w_h,
                     preferred_element_type=jnp.float32)      # (B, 3H)
        r = jax.nn.sigmoid(gi_t[:, 0:H] + gh[:, 0:H])
        z = jax.nn.sigmoid(gi_t[:, H:2 * H] + gh[:, H:2 * H])
        n = jnp.tanh(gi_t[:, 2 * H:3 * H] + r * (gh[:, 2 * H:3 * H] + b_hn))
        h = (1.0 - z) * n + z * h

    # ---- Regression head on the final hidden state (head weights are
    # lane-padded to 3H so they reuse the same slab; first F lanes valid).
    head = jnp.dot(h.astype(cdt), w_o, preferred_element_type=jnp.float32)
    out_ref[...] = head[:, 0:F] + b_o


def pack_decoder_params(params, compute_dtype=jnp.bfloat16):
    """One-time packing of all GRU + head parameters into two slabs.

    Returns (w_slab, b_slab):
      w_slab (rows, 3H) in `compute_dtype`, sections [input | hidden | head],
             each section start aligned to 16 rows; gate order r|z|n on lanes.
      b_slab (3, 3H) f32: row0 folded input-side bias, row1 b_hh_n (lane
             padded), row2 head bias (lane padded).
    """
    w_ih = jnp.asarray(params["w_ih"], jnp.float32)    # (3H, F), gates r,z,n
    w_hh = jnp.asarray(params["w_hh"], jnp.float32)    # (3H, H)
    b_ih = jnp.asarray(params["b_ih"], jnp.float32)    # (3H,)
    b_hh = jnp.asarray(params["b_hh"], jnp.float32)    # (3H,)
    w_reg = jnp.asarray(params["w_reg"], jnp.float32)  # (F, H)
    b_reg = jnp.asarray(params["b_reg"], jnp.float32)  # (F,)

    H = w_hh.shape[-1]
    F = w_ih.shape[-1]
    assert F <= 3 * H, "head packing assumes n_features <= 3*hidden_dim"

    off_h = _round_up(F, _SECTION_ALIGN)
    off_o = off_h + _round_up(H, _SECTION_ALIGN)
    rows = off_o + H

    w_i = w_ih.T                                         # (F, 3H)
    w_h = w_hh.T                                         # (H, 3H)
    w_o = jnp.pad(w_reg.T, ((0, 0), (0, 3 * H - F)))     # (H, 3H) lane-padded

    w_slab = jnp.zeros((rows, 3 * H), jnp.float32)
    w_slab = w_slab.at[0:F].set(w_i)
    w_slab = w_slab.at[off_h:off_h + H].set(w_h)
    w_slab = w_slab.at[off_o:off_o + H].set(w_o)
    w_slab = w_slab.astype(compute_dtype)

    # Bias fold: r/z gates merge b_ih + b_hh; the n gate keeps b_hh_n
    # separate (it sits inside the r* term).
    b_fold = jnp.concatenate([b_ih[0:H] + b_hh[0:H],
                              b_ih[H:2 * H] + b_hh[H:2 * H],
                              b_ih[2 * H:3 * H]])
    b_hn = jnp.pad(b_hh[2 * H:3 * H], (0, 2 * H))
    b_out = jnp.pad(b_reg, (0, 3 * H - F))
    b_slab = jnp.stack([b_fold, b_hn, b_out]).astype(jnp.float32)   # (3, 3H)

    return w_slab, b_slab


def decoder_forward(X, h0, w_slab, b_slab):
    """X: (B, S, F) batch-first; h0: (B, H). Returns (B, 1, F) float32."""
    B, S, F = X.shape
    H = h0.shape[-1]
    off_h = _round_up(F, _SECTION_ALIGN)
    off_o = off_h + _round_up(H, _SECTION_ALIGN)

    # Time-major + flat: row t*B + b is x[b, t, :].  Cast to the matmul
    # operand dtype here so transpose + reshape + cast fuse into one tiny
    # copy on the (256 B) input instead of separate per-call prep ops.
    x_tm = jnp.transpose(X, (1, 0, 2)).reshape(S * B, F).astype(w_slab.dtype)

    kernel = functools.partial(_decoder_kernel, seq_len=S, batch=B,
                               n_features=F, hidden=H,
                               off_h=off_h, off_o=off_o)

    # Gridless single invocation: every operand is a full-array VMEM block
    # (KB-scale, fits trivially on v5e/v6e/v7x).  For larger S/B/H, add a
    # time-chunked grid ("arbitrary") and a "parallel" batch axis for v7x.
    out = pl.pallas_call(
        kernel,
        out_shape=jax.ShapeDtypeStruct((B, F), jnp.float32),
    )(x_tm, h0.astype(jnp.float32), w_slab, b_slab)

    return out.reshape(-1, 1, F)


def decoder_reference(X, h0, params):
    """Plain-JAX reference matching torch.nn.GRU + Linear semantics."""
    H = h0.shape[-1]
    w_ih, w_hh = params["w_ih"], params["w_hh"]
    b_ih, b_hh = params["b_ih"], params["b_hh"]

    def step(h, x_t):
        gi = x_t @ w_ih.T + b_ih
        gh = h @ w_hh.T + b_hh
        i_r, i_z, i_n = gi[:, :H], gi[:, H:2 * H], gi[:, 2 * H:]
        h_r, h_z, h_n = gh[:, :H], gh[:, H:2 * H], gh[:, 2 * H:]
        r = jax.nn.sigmoid(i_r + h_r)
        z = jax.nn.sigmoid(i_z + h_z)
        n = jnp.tanh(i_n + r * h_n)
        h_new = (1.0 - z) * n + z * h
        return h_new, h_new

    x_tm = jnp.transpose(X, (1, 0, 2))
    h_last, _ = jax.lax.scan(step, h0, x_tm)
    out = h_last @ params["w_reg"].T + params["b_reg"]
    return out.reshape(-1, 1, X.shape[-1])


if __name__ == "__main__":
    B, S, F, H = 2, 8, 4, 32

    key = jax.random.PRNGKey(0)
    ks = jax.random.split(key, 8)

    # Deterministic synthetic parameters (shapes match nn.GRU / nn.Linear).
    scale = 1.0 / np.sqrt(H)
    params = {
        "w_ih": jax.random.uniform(ks[0], (3 * H, F), jnp.float32, -scale, scale),
        "w_hh": jax.random.uniform(ks[1], (3 * H, H), jnp.float32, -scale, scale),
        "b_ih": jax.random.uniform(ks[2], (3 * H,), jnp.float32, -scale, scale),
        "b_hh": jax.random.uniform(ks[3], (3 * H,), jnp.float32, -scale, scale),
        "w_reg": jax.random.uniform(ks[4], (F, H), jnp.float32, -scale, scale),
        "b_reg": jax.random.uniform(ks[5], (F,), jnp.float32, -scale, scale),
    }

    X = jax.random.normal(ks[6], (B, S, F), jnp.float32)
    # Hidden as set by init_hidden(): (1, B, H) permuted -> kernel uses (B, H).
    h0 = jax.random.normal(ks[7], (B, H), jnp.float32)

    ref = decoder_reference(X, h0, params)
    fwd = jax.jit(decoder_forward)

    # f32 matmul-operand path: exact GRU math (modulo bias-add reassociation).
    w32, b32 = pack_decoder_params(params, jnp.float32)
    out32 = jax.block_until_ready(fwd(X, h0, w32, b32))
    np.testing.assert_allclose(np.asarray(out32), np.asarray(ref),
                               rtol=1e-5, atol=1e-5)

    # bf16 matmul-operand fast path (f32 accumulation + f32 gate math):
    # not bit-exact vs the f32 reference, so a looser tolerance applies.
    wbf, bbf = pack_decoder_params(params, jnp.bfloat16)
    outbf = jax.block_until_ready(fwd(X, h0, wbf, bbf))
    np.testing.assert_allclose(np.asarray(outbf), np.asarray(ref),
                               rtol=2e-2, atol=2e-2)

    assert out32.shape == (B, 1, F) and outbf.shape == (B, 1, F)
    print("KERNEL_OK")
</pallas_src>

<mosaic_0001>
module attributes {stable_mosaic.version = 11 : i64} {
  func.func @_decoder_kernel(%arg0: memref<16x4xf32, #tpu.memory_space<vmem>>, %arg1: memref<2x32xf32, #tpu.memory_space<vmem>>, %arg2: memref<80x96xf32, #tpu.memory_space<vmem>>, %arg3: memref<3x96xf32, #tpu.memory_space<vmem>>, %arg4: memref<2x4xf32, #tpu.memory_space<vmem>>) attributes {dimension_semantics = [], scalar_prefetch = 0 : i64, scratch_operands = 0 : i64, tpu.core_type = #tpu.core_type<tc>} {
    %c0 = arith.constant 0 : index
    %c0_0 = arith.constant 0 : index
    %0 = vector.load %arg2[%c0, %c0_0] : memref<80x96xf32, #tpu.memory_space<vmem>>, vector<4x96xf32>
    %c16 = arith.constant 16 : index
    %c0_1 = arith.constant 0 : index
    %1 = vector.load %arg2[%c16, %c0_1] : memref<80x96xf32, #tpu.memory_space<vmem>>, vector<32x96xf32>
    %c48 = arith.constant 48 : index
    %c0_2 = arith.constant 0 : index
    %2 = vector.load %arg2[%c48, %c0_2] : memref<80x96xf32, #tpu.memory_space<vmem>>, vector<32x96xf32>
    %c0_3 = arith.constant 0 : index
    %c0_4 = arith.constant 0 : index
    %3 = vector.load %arg3[%c0_3, %c0_4] : memref<3x96xf32, #tpu.memory_space<vmem>>, vector<1x96xf32>
    %c1 = arith.constant 1 : index
    %c0_5 = arith.constant 0 : index
    %4 = vector.load %arg3[%c1, %c0_5] : memref<3x96xf32, #tpu.memory_space<vmem>>, vector<1x32xf32>
    %5 = vector.shape_cast %4 : vector<1x32xf32> to vector<1x32xf32>
    %6 = vector.broadcast %5 : vector<1x32xf32> to vector<2x32xf32>
    %c2 = arith.constant 2 : index
    %c0_6 = arith.constant 0 : index
    %7 = vector.load %arg3[%c2, %c0_6] : memref<3x96xf32, #tpu.memory_space<vmem>>, vector<1x4xf32>
    %c0_7 = arith.constant 0 : index
    %c0_8 = arith.constant 0 : index
    %8 = vector.load %arg0[%c0_7, %c0_8] : memref<16x4xf32, #tpu.memory_space<vmem>>, vector<16x4xf32>
    %cst = arith.constant dense<0.000000e+00> : vector<16x96xf32>
    %9 = tpu.matmul %8, %0, %cst {dimension_numbers = #tpu.dot_dimension_numbers<[1], [0], [0], [1], [0, 0, 1, 1], [], []>} : vector<16x4xf32>, vector<4x96xf32>, vector<16x96xf32> -> vector<16x96xf32>
    %10 = vector.broadcast %3 : vector<1x96xf32> to vector<16x96xf32>
    %11 = arith.addf %9, %10 : vector<16x96xf32>
    %c0_9 = arith.constant 0 : index
    %c0_10 = arith.constant 0 : index
    %12 = vector.load %arg1[%c0_9, %c0_10] : memref<2x32xf32, #tpu.memory_space<vmem>>, vector<2x32xf32>
    %13 = vector.extract_strided_slice %11 {offsets = [0, 0], sizes = [2, 96], strides = [1, 1]} : vector<16x96xf32> to vector<2x96xf32>
    %cst_11 = arith.constant dense<0.000000e+00> : vector<2x96xf32>
    %14 = tpu.matmul %12, %1, %cst_11 {dimension_numbers = #tpu.dot_dimension_numbers<[1], [0], [0], [1], [0, 0, 1, 1], [], []>} : vector<2x32xf32>, vector<32x96xf32>, vector<2x96xf32> -> vector<2x96xf32>
    %15 = vector.extract_strided_slice %13 {offsets = [0, 0], sizes = [2, 32], strides = [1, 1]} : vector<2x96xf32> to vector<2x32xf32>
    %16 = vector.extract_strided_slice %14 {offsets = [0, 0], sizes = [2, 32], strides = [1, 1]} : vector<2x96xf32> to vector<2x32xf32>
    %17 = arith.addf %15, %16 : vector<2x32xf32>
    %18 = arith.negf %17 : vector<2x32xf32>
    %19 = math.exp %18 : vector<2x32xf32>
    %cst_12 = arith.constant 1.000000e+00 : f32
    %20 = vector.broadcast %cst_12 : f32 to vector<2x32xf32>
    %21 = arith.addf %20, %19 : vector<2x32xf32>
    %22 = arith.divf %20, %21 : vector<2x32xf32>
    %23 = vector.extract_strided_slice %13 {offsets = [0, 32], sizes = [2, 32], strides = [1, 1]} : vector<2x96xf32> to vector<2x32xf32>
    %24 = vector.extract_strided_slice %14 {offsets = [0, 32], sizes = [2, 32], strides = [1, 1]} : vector<2x96xf32> to vector<2x32xf32>
    %25 = arith.addf %23, %24 : vector<2x32xf32>
    %26 = arith.negf %25 : vector<2x32xf32>
    %27 = math.exp %26 : vector<2x32xf32>
    %cst_13 = arith.constant 1.000000e+00 : f32
    %28 = vector.broadcast %cst_13 : f32 to vector<2x32xf32>
    %29 = arith.addf %28, %27 : vector<2x32xf32>
    %30 = arith.divf %28, %29 : vector<2x32xf32>
    %31 = vector.extract_strided_slice %13 {offsets = [0, 64], sizes = [2, 32], strides = [1, 1]} : vector<2x96xf32> to vector<2x32xf32>
    %32 = vector.extract_strided_slice %14 {offsets = [0, 64], sizes = [2, 32], strides = [1, 1]} : vector<2x96xf32> to vector<2x32xf32>
    %33 = arith.addf %32, %6 : vector<2x32xf32>
    %34 = arith.mulf %22, %33 : vector<2x32xf32>
    %35 = arith.addf %31, %34 : vector<2x32xf32>
    %36 = math.tanh %35 : vector<2x32xf32>
    %cst_14 = arith.constant 1.000000e+00 : f32
    %37 = vector.broadcast %cst_14 : f32 to vector<2x32xf32>
    %38 = arith.subf %37, %30 : vector<2x32xf32>
    %39 = arith.mulf %38, %36 : vector<2x32xf32>
    %40 = arith.mulf %30, %12 : vector<2x32xf32>
    %41 = arith.addf %39, %40 : vector<2x32xf32>
    %42 = vector.extract_strided_slice %11 {offsets = [2, 0], sizes = [2, 96], strides = [1, 1]} : vector<16x96xf32> to vector<2x96xf32>
    %cst_15 = arith.constant dense<0.000000e+00> : vector<2x96xf32>
    %43 = tpu.matmul %41, %1, %cst_15 {dimension_numbers = #tpu.dot_dimension_numbers<[1], [0], [0], [1], [0, 0, 1, 1], [], []>} : vector<2x32xf32>, vector<32x96xf32>, vector<2x96xf32> -> vector<2x96xf32>
    %44 = vector.extract_strided_slice %42 {offsets = [0, 0], sizes = [2, 32], strides = [1, 1]} : vector<2x96xf32> to vector<2x32xf32>
    %45 = vector.extract_strided_slice %43 {offsets = [0, 0], sizes = [2, 32], strides = [1, 1]} : vector<2x96xf32> to vector<2x32xf32>
    %46 = arith.addf %44, %45 : vector<2x32xf32>
    %47 = arith.negf %46 : vector<2x32xf32>
    %48 = math.exp %47 : vector<2x32xf32>
    %cst_16 = arith.constant 1.000000e+00 : f32
    %49 = vector.broadcast %cst_16 : f32 to vector<2x32xf32>
    %50 = arith.addf %49, %48 : vector<2x32xf32>
    %51 = arith.divf %49, %50 : vector<2x32xf32>
    %52 = vector.extract_strided_slice %42 {offsets = [0, 32], sizes = [2, 32], strides = [1, 1]} : vector<2x96xf32> to vector<2x32xf32>
    %53 = vector.extract_strided_slice %43 {offsets = [0, 32], sizes = [2, 32], strides = [1, 1]} : vector<2x96xf32> to vector<2x32xf32>
    %54 = arith.addf %52, %53 : vector<2x32xf32>
    %55 = arith.negf %54 : vector<2x32xf32>
    %56 = math.exp %55 : vector<2x32xf32>
    %cst_17 = arith.constant 1.000000e+00 : f32
    %57 = vector.broadcast %cst_17 : f32 to vector<2x32xf32>
    %58 = arith.addf %57, %56 : vector<2x32xf32>
    %59 = arith.divf %57, %58 : vector<2x32xf32>
    %60 = vector.extract_strided_slice %42 {offsets = [0, 64], sizes = [2, 32], strides = [1, 1]} : vector<2x96xf32> to vector<2x32xf32>
    %61 = vector.extract_strided_slice %43 {offsets = [0, 64], sizes = [2, 32], strides = [1, 1]} : vector<2x96xf32> to vector<2x32xf32>
    %62 = arith.addf %61, %6 : vector<2x32xf32>
    %63 = arith.mulf %51, %62 : vector<2x32xf32>
    %64 = arith.addf %60, %63 : vector<2x32xf32>
    %65 = math.tanh %64 : vector<2x32xf32>
    %cst_18 = arith.constant 1.000000e+00 : f32
    %66 = vector.broadcast %cst_18 : f32 to vector<2x32xf32>
    %67 = arith.subf %66, %59 : vector<2x32xf32>
    %68 = arith.mulf %67, %65 : vector<2x32xf32>
    %69 = arith.mulf %59, %41 : vector<2x32xf32>
    %70 = arith.addf %68, %69 : vector<2x32xf32>
    %71 = vector.extract_strided_slice %11 {offsets = [4, 0], sizes = [2, 96], strides = [1, 1]} : vector<16x96xf32> to vector<2x96xf32>
    %cst_19 = arith.constant dense<0.000000e+00> : vector<2x96xf32>
    %72 = tpu.matmul %70, %1, %cst_19 {dimension_numbers = #tpu.dot_dimension_numbers<[1], [0], [0], [1], [0, 0, 1, 1], [], []>} : vector<2x32xf32>, vector<32x96xf32>, vector<2x96xf32> -> vector<2x96xf32>
    %73 = vector.extract_strided_slice %71 {offsets = [0, 0], sizes = [2, 32], strides = [1, 1]} : vector<2x96xf32> to vector<2x32xf32>
    %74 = vector.extract_strided_slice %72 {offsets = [0, 0], sizes = [2, 32], strides = [1, 1]} : vector<2x96xf32> to vector<2x32xf32>
    %75 = arith.addf %73, %74 : vector<2x32xf32>
    %76 = arith.negf %75 : vector<2x32xf32>
    %77 = math.exp %76 : vector<2x32xf32>
    %cst_20 = arith.constant 1.000000e+00 : f32
    %78 = vector.broadcast %cst_20 : f32 to vector<2x32xf32>
    %79 = arith.addf %78, %77 : vector<2x32xf32>
    %80 = arith.divf %78, %79 : vector<2x32xf32>
    %81 = vector.extract_strided_slice %71 {offsets = [0, 32], sizes = [2, 32], strides = [1, 1]} : vector<2x96xf32> to vector<2x32xf32>
    %82 = vector.extract_strided_slice %72 {offsets = [0, 32], sizes = [2, 32], strides = [1, 1]} : vector<2x96xf32> to vector<2x32xf32>
    %83 = arith.addf %81, %82 : vector<2x32xf32>
    %84 = arith.negf %83 : vector<2x32xf32>
    %85 = math.exp %84 : vector<2x32xf32>
    %cst_21 = arith.constant 1.000000e+00 : f32
    %86 = vector.broadcast %cst_21 : f32 to vector<2x32xf32>
    %87 = arith.addf %86, %85 : vector<2x32xf32>
    %88 = arith.divf %86, %87 : vector<2x32xf32>
    %89 = vector.extract_strided_slice %71 {offsets = [0, 64], sizes = [2, 32], strides = [1, 1]} : vector<2x96xf32> to vector<2x32xf32>
    %90 = vector.extract_strided_slice %72 {offsets = [0, 64], sizes = [2, 32], strides = [1, 1]} : vector<2x96xf32> to vector<2x32xf32>
    %91 = arith.addf %90, %6 : vector<2x32xf32>
    %92 = arith.mulf %80, %91 : vector<2x32xf32>
    %93 = arith.addf %89, %92 : vector<2x32xf32>
    %94 = math.tanh %93 : vector<2x32xf32>
    %cst_22 = arith.constant 1.000000e+00 : f32
    %95 = vector.broadcast %cst_22 : f32 to vector<2x32xf32>
    %96 = arith.subf %95, %88 : vector<2x32xf32>
    %97 = arith.mulf %96, %94 : vector<2x32xf32>
    %98 = arith.mulf %88, %70 : vector<2x32xf32>
    %99 = arith.addf %97, %98 : vector<2x32xf32>
    %100 = vector.extract_strided_slice %11 {offsets = [6, 0], sizes = [2, 96], strides = [1, 1]} : vector<16x96xf32> to vector<2x96xf32>
    %cst_23 = arith.constant dense<0.000000e+00> : vector<2x96xf32>
    %101 = tpu.matmul %99, %1, %cst_23 {dimension_numbers = #tpu.dot_dimension_numbers<[1], [0], [0], [1], [0, 0, 1, 1], [], []>} : vector<2x32xf32>, vector<32x96xf32>, vector<2x96xf32> -> vector<2x96xf32>
    %102 = vector.extract_strided_slice %100 {offsets = [0, 0], sizes = [2, 32], strides = [1, 1]} : vector<2x96xf32> to vector<2x32xf32>
    %103 = vector.extract_strided_slice %101 {offsets = [0, 0], sizes = [2, 32], strides = [1, 1]} : vector<2x96xf32> to vector<2x32xf32>
    %104 = arith.addf %102, %103 : vector<2x32xf32>
    %105 = arith.negf %104 : vector<2x32xf32>
    %106 = math.exp %105 : vector<2x32xf32>
    %cst_24 = arith.constant 1.000000e+00 : f32
    %107 = vector.broadcast %cst_24 : f32 to vector<2x32xf32>
    %108 = arith.addf %107, %106 : vector<2x32xf32>
    %109 = arith.divf %107, %108 : vector<2x32xf32>
    %110 = vector.extract_strided_slice %100 {offsets = [0, 32], sizes = [2, 32], strides = [1, 1]} : vector<2x96xf32> to vector<2x32xf32>
    %111 = vector.extract_strided_slice %101 {offsets = [0, 32], sizes = [2, 32], strides = [1, 1]} : vector<2x96xf32> to vector<2x32xf32>
    %112 = arith.addf %110, %111 : vector<2x32xf32>
    %113 = arith.negf %112 : vector<2x32xf32>
    %114 = math.exp %113 : vector<2x32xf32>
    %cst_25 = arith.constant 1.000000e+00 : f32
    %115 = vector.broadcast %cst_25 : f32 to vector<2x32xf32>
    %116 = arith.addf %115, %114 : vector<2x32xf32>
    %117 = arith.divf %115, %116 : vector<2x32xf32>
    %118 = vector.extract_strided_slice %100 {offsets = [0, 64], sizes = [2, 32], strides = [1, 1]} : vector<2x96xf32> to vector<2x32xf32>
    %119 = vector.extract_strided_slice %101 {offsets = [0, 64], sizes = [2, 32], strides = [1, 1]} : vector<2x96xf32> to vector<2x32xf32>
    %120 = arith.addf %119, %6 : vector<2x32xf32>
    %121 = arith.mulf %109, %120 : vector<2x32xf32>
    %122 = arith.addf %118, %121 : vector<2x32xf32>
    %123 = math.tanh %122 : vector<2x32xf32>
    %cst_26 = arith.constant 1.000000e+00 : f32
    %124 = vector.broadcast %cst_26 : f32 to vector<2x32xf32>
    %125 = arith.subf %124, %117 : vector<2x32xf32>
    %126 = arith.mulf %125, %123 : vector<2x32xf32>
    %127 = arith.mulf %117, %99 : vector<2x32xf32>
    %128 = arith.addf %126, %127 : vector<2x32xf32>
    %129 = vector.extract_strided_slice %11 {offsets = [8, 0], sizes = [2, 96], strides = [1, 1]} : vector<16x96xf32> to vector<2x96xf32>
    %cst_27 = arith.constant dense<0.000000e+00> : vector<2x96xf32>
    %130 = tpu.matmul %128, %1, %cst_27 {dimension_numbers = #tpu.dot_dimension_numbers<[1], [0], [0], [1], [0, 0, 1, 1], [], []>} : vector<2x32xf32>, vector<32x96xf32>, vector<2x96xf32> -> vector<2x96xf32>
    %131 = vector.extract_strided_slice %129 {offsets = [0, 0], sizes = [2, 32], strides = [1, 1]} : vector<2x96xf32> to vector<2x32xf32>
    %132 = vector.extract_strided_slice %130 {offsets = [0, 0], sizes = [2, 32], strides = [1, 1]} : vector<2x96xf32> to vector<2x32xf32>
    %133 = arith.addf %131, %132 : vector<2x32xf32>
    %134 = arith.negf %133 : vector<2x32xf32>
    %135 = math.exp %134 : vector<2x32xf32>
    %cst_28 = arith.constant 1.000000e+00 : f32
    %136 = vector.broadcast %cst_28 : f32 to vector<2x32xf32>
    %137 = arith.addf %136, %135 : vector<2x32xf32>
    %138 = arith.divf %136, %137 : vector<2x32xf32>
    %139 = vector.extract_strided_slice %129 {offsets = [0, 32], sizes = [2, 32], strides = [1, 1]} : vector<2x96xf32> to vector<2x32xf32>
    %140 = vector.extract_strided_slice %130 {offsets = [0, 32], sizes = [2, 32], strides = [1, 1]} : vector<2x96xf32> to vector<2x32xf32>
    %141 = arith.addf %139, %140 : vector<2x32xf32>
    %142 = arith.negf %141 : vector<2x32xf32>
    %143 = math.exp %142 : vector<2x32xf32>
    %cst_29 = arith.constant 1.000000e+00 : f32
    %144 = vector.broadcast %cst_29 : f32 to vector<2x32xf32>
    %145 = arith.addf %144, %143 : vector<2x32xf32>
    %146 = arith.divf %144, %145 : vector<2x32xf32>
    %147 = vector.extract_strided_slice %129 {offsets = [0, 64], sizes = [2, 32], strides = [1, 1]} : vector<2x96xf32> to vector<2x32xf32>
    %148 = vector.extract_strided_slice %130 {offsets = [0, 64], sizes = [2, 32], strides = [1, 1]} : vector<2x96xf32> to vector<2x32xf32>
    %149 = arith.addf %148, %6 : vector<2x32xf32>
    %150 = arith.mulf %138, %149 : vector<2x32xf32>
    %151 = arith.addf %147, %150 : vector<2x32xf32>
    %152 = math.tanh %151 : vector<2x32xf32>
    %cst_30 = arith.constant 1.000000e+00 : f32
    %153 = vector.broadcast %cst_30 : f32 to vector<2x32xf32>
    %154 = arith.subf %153, %146 : vector<2x32xf32>
    %155 = arith.mulf %154, %152 : vector<2x32xf32>
    %156 = arith.mulf %146, %128 : vector<2x32xf32>
    %157 = arith.addf %155, %156 : vector<2x32xf32>
    %158 = vector.extract_strided_slice %11 {offsets = [10, 0], sizes = [2, 96], strides = [1, 1]} : vector<16x96xf32> to vector<2x96xf32>
    %cst_31 = arith.constant dense<0.000000e+00> : vector<2x96xf32>
    %159 = tpu.matmul %157, %1, %cst_31 {dimension_numbers = #tpu.dot_dimension_numbers<[1], [0], [0], [1], [0, 0, 1, 1], [], []>} : vector<2x32xf32>, vector<32x96xf32>, vector<2x96xf32> -> vector<2x96xf32>
    %160 = vector.extract_strided_slice %158 {offsets = [0, 0], sizes = [2, 32], strides = [1, 1]} : vector<2x96xf32> to vector<2x32xf32>
    %161 = vector.extract_strided_slice %159 {offsets = [0, 0], sizes = [2, 32], strides = [1, 1]} : vector<2x96xf32> to vector<2x32xf32>
    %162 = arith.addf %160, %161 : vector<2x32xf32>
    %163 = arith.negf %162 : vector<2x32xf32>
    %164 = math.exp %163 : vector<2x32xf32>
    %cst_32 = arith.constant 1.000000e+00 : f32
    %165 = vector.broadcast %cst_32 : f32 to vector<2x32xf32>
    %166 = arith.addf %165, %164 : vector<2x32xf32>
    %167 = arith.divf %165, %166 : vector<2x32xf32>
    %168 = vector.extract_strided_slice %158 {offsets = [0, 32], sizes = [2, 32], strides = [1, 1]} : vector<2x96xf32> to vector<2x32xf32>
    %169 = vector.extract_strided_slice %159 {offsets = [0, 32], sizes = [2, 32], strides = [1, 1]} : vector<2x96xf32> to vector<2x32xf32>
    %170 = arith.addf %168, %169 : vector<2x32xf32>
    %171 = arith.negf %170 : vector<2x32xf32>
    %172 = math.exp %171 : vector<2x32xf32>
    %cst_33 = arith.constant 1.000000e+00 : f32
    %173 = vector.broadcast %cst_33 : f32 to vector<2x32xf32>
    %174 = arith.addf %173, %172 : vector<2x32xf32>
    %175 = arith.divf %173, %174 : vector<2x32xf32>
    %176 = vector.extract_strided_slice %158 {offsets = [0, 64], sizes = [2, 32], strides = [1, 1]} : vector<2x96xf32> to vector<2x32xf32>
    %177 = vector.extract_strided_slice %159 {offsets = [0, 64], sizes = [2, 32], strides = [1, 1]} : vector<2x96xf32> to vector<2x32xf32>
    %178 = arith.addf %177, %6 : vector<2x32xf32>
    %179 = arith.mulf %167, %178 : vector<2x32xf32>
    %180 = arith.addf %176, %179 : vector<2x32xf32>
    %181 = math.tanh %180 : vector<2x32xf32>
    %cst_34 = arith.constant 1.000000e+00 : f32
    %182 = vector.broadcast %cst_34 : f32 to vector<2x32xf32>
    %183 = arith.subf %182, %175 : vector<2x32xf32>
    %184 = arith.mulf %183, %181 : vector<2x32xf32>
    %185 = arith.mulf %175, %157 : vector<2x32xf32>
    %186 = arith.addf %184, %185 : vector<2x32xf32>
    %187 = vector.extract_strided_slice %11 {offsets = [12, 0], sizes = [2, 96], strides = [1, 1]} : vector<16x96xf32> to vector<2x96xf32>
    %cst_35 = arith.constant dense<0.000000e+00> : vector<2x96xf32>
    %188 = tpu.matmul %186, %1, %cst_35 {dimension_numbers = #tpu.dot_dimension_numbers<[1], [0], [0], [1], [0, 0, 1, 1], [], []>} : vector<2x32xf32>, vector<32x96xf32>, vector<2x96xf32> -> vector<2x96xf32>
    %189 = vector.extract_strided_slice %187 {offsets = [0, 0], sizes = [2, 32], strides = [1, 1]} : vector<2x96xf32> to vector<2x32xf32>
    %190 = vector.extract_strided_slice %188 {offsets = [0, 0], sizes = [2, 32], strides = [1, 1]} : vector<2x96xf32> to vector<2x32xf32>
    %191 = arith.addf %189, %190 : vector<2x32xf32>
    %192 = arith.negf %191 : vector<2x32xf32>
    %193 = math.exp %192 : vector<2x32xf32>
    %cst_36 = arith.constant 1.000000e+00 : f32
    %194 = vector.broadcast %cst_36 : f32 to vector<2x32xf32>
    %195 = arith.addf %194, %193 : vector<2x32xf32>
    %196 = arith.divf %194, %195 : vector<2x32xf32>
    %197 = vector.extract_strided_slice %187 {offsets = [0, 32], sizes = [2, 32], strides = [1, 1]} : vector<2x96xf32> to vector<2x32xf32>
    %198 = vector.extract_strided_slice %188 {offsets = [0, 32], sizes = [2, 32], strides = [1, 1]} : vector<2x96xf32> to vector<2x32xf32>
    %199 = arith.addf %197, %198 : vector<2x32xf32>
    %200 = arith.negf %199 : vector<2x32xf32>
    %201 = math.exp %200 : vector<2x32xf32>
    %cst_37 = arith.constant 1.000000e+00 : f32
    %202 = vector.broadcast %cst_37 : f32 to vector<2x32xf32>
    %203 = arith.addf %202, %201 : vector<2x32xf32>
    %204 = arith.divf %202, %203 : vector<2x32xf32>
    %205 = vector.extract_strided_slice %187 {offsets = [0, 64], sizes = [2, 32], strides = [1, 1]} : vector<2x96xf32> to vector<2x32xf32>
    %206 = vector.extract_strided_slice %188 {offsets = [0, 64], sizes = [2, 32], strides = [1, 1]} : vector<2x96xf32> to vector<2x32xf32>
    %207 = arith.addf %206, %6 : vector<2x32xf32>
    %208 = arith.mulf %196, %207 : vector<2x32xf32>
    %209 = arith.addf %205, %208 : vector<2x32xf32>
    %210 = math.tanh %209 : vector<2x32xf32>
    %cst_38 = arith.constant 1.000000e+00 : f32
    %211 = vector.broadcast %cst_38 : f32 to vector<2x32xf32>
    %212 = arith.subf %211, %204 : vector<2x32xf32>
    %213 = arith.mulf %212, %210 : vector<2x32xf32>
    %214 = arith.mulf %204, %186 : vector<2x32xf32>
    %215 = arith.addf %213, %214 : vector<2x32xf32>
    %216 = vector.extract_strided_slice %11 {offsets = [14, 0], sizes = [2, 96], strides = [1, 1]} : vector<16x96xf32> to vector<2x96xf32>
    %cst_39 = arith.constant dense<0.000000e+00> : vector<2x96xf32>
    %217 = tpu.matmul %215, %1, %cst_39 {dimension_numbers = #tpu.dot_dimension_numbers<[1], [0], [0], [1], [0, 0, 1, 1], [], []>} : vector<2x32xf32>, vector<32x96xf32>, vector<2x96xf32> -> vector<2x96xf32>
    %218 = vector.extract_strided_slice %216 {offsets = [0, 0], sizes = [2, 32], strides = [1, 1]} : vector<2x96xf32> to vector<2x32xf32>
    %219 = vector.extract_strided_slice %217 {offsets = [0, 0], sizes = [2, 32], strides = [1, 1]} : vector<2x96xf32> to vector<2x32xf32>
    %220 = arith.addf %218, %219 : vector<2x32xf32>
    %221 = arith.negf %220 : vector<2x32xf32>
    %222 = math.exp %221 : vector<2x32xf32>
    %cst_40 = arith.constant 1.000000e+00 : f32
    %223 = vector.broadcast %cst_40 : f32 to vector<2x32xf32>
    %224 = arith.addf %223, %222 : vector<2x32xf32>
    %225 = arith.divf %223, %224 : vector<2x32xf32>
    %226 = vector.extract_strided_slice %216 {offsets = [0, 32], sizes = [2, 32], strides = [1, 1]} : vector<2x96xf32> to vector<2x32xf32>
    %227 = vector.extract_strided_slice %217 {offsets = [0, 32], sizes = [2, 32], strides = [1, 1]} : vector<2x96xf32> to vector<2x32xf32>
    %228 = arith.addf %226, %227 : vector<2x32xf32>
    %229 = arith.negf %228 : vector<2x32xf32>
    %230 = math.exp %229 : vector<2x32xf32>
    %cst_41 = arith.constant 1.000000e+00 : f32
    %231 = vector.broadcast %cst_41 : f32 to vector<2x32xf32>
    %232 = arith.addf %231, %230 : vector<2x32xf32>
    %233 = arith.divf %231, %232 : vector<2x32xf32>
    %234 = vector.extract_strided_slice %216 {offsets = [0, 64], sizes = [2, 32], strides = [1, 1]} : vector<2x96xf32> to vector<2x32xf32>
    %235 = vector.extract_strided_slice %217 {offsets = [0, 64], sizes = [2, 32], strides = [1, 1]} : vector<2x96xf32> to vector<2x32xf32>
    %236 = arith.addf %235, %6 : vector<2x32xf32>
    %237 = arith.mulf %225, %236 : vector<2x32xf32>
    %238 = arith.addf %234, %237 : vector<2x32xf32>
    %239 = math.tanh %238 : vector<2x32xf32>
    %cst_42 = arith.constant 1.000000e+00 : f32
    %240 = vector.broadcast %cst_42 : f32 to vector<2x32xf32>
    %241 = arith.subf %240, %233 : vector<2x32xf32>
    %242 = arith.mulf %241, %239 : vector<2x32xf32>
    %243 = arith.mulf %233, %215 : vector<2x32xf32>
    %244 = arith.addf %242, %243 : vector<2x32xf32>
    %cst_43 = arith.constant dense<0.000000e+00> : vector<2x96xf32>
    %245 = tpu.matmul %244, %2, %cst_43 {dimension_numbers = #tpu.dot_dimension_numbers<[1], [0], [0], [1], [0, 0, 1, 1], [], []>} : vector<2x32xf32>, vector<32x96xf32>, vector<2x96xf32> -> vector<2x96xf32>
    %246 = vector.extract_strided_slice %245 {offsets = [0, 0], sizes = [2, 4], strides = [1, 1]} : vector<2x96xf32> to vector<2x4xf32>
    %247 = vector.broadcast %7 : vector<1x4xf32> to vector<2x4xf32>
    %248 = arith.addf %246, %247 : vector<2x4xf32>
    %c0_44 = arith.constant 0 : index
    %c0_45 = arith.constant 0 : index
    %249 = vector.load %arg4[%c0_44, %c0_45] : memref<2x4xf32, #tpu.memory_space<vmem>>, vector<2x4xf32>
    tpu.vector_store %arg4[%c0_44, %c0_45], %248 {strides = array<i32>} : memref<2x4xf32, #tpu.memory_space<vmem>>, vector<2x4xf32>,
    return
  }
}

</mosaic_0001>

<bundles_post_ra>
// kernel: decoder_forward.1
= control target key start
LH: loop header
LB: loop body
LE: loop exit
PB: predicated region body
PF: predicated region fallthrough
CT: control target
= control target key end

     0   :  { %9 = vsyncpa [#allocation3], 0  ;;  %s964_s0 = inlined_call_operand.vmem [shape: f32[16,4], index: 0, kind: input, shape index: {}]   ;;  %s965_s1 = inlined_call_operand.vmem [shape: f32[2,32], index: 1, kind: input, shape index: {}]   ;;  %s966_s2 = inlined_call_operand.hbm [shape: f32[80,96], index: 2, kind: input, shape index: {}]   ;;  %s967_s3 = inlined_call_operand.vmem [shape: f32[3,96], index: 3, kind: input, shape index: {}]   ;;  %s968_s4 = inlined_call_operand.hbm [shape: f32[2,4], index: 4, kind: output, shape index: {}]  }
   0x1   :  { %10 = vsyncpa [#allocation4], 0  ;;  %s19_s17 = sshll.u32 %s966_s2, 4  ;;  %s830_s18 = smov [#allocation2]   ;;  %s20_s17 = int_to_ptr.hbm [resolvable:$true] %s19_s17 }
   0x2   :  { %s21_s19 = sshll.u32 %s830_s18, 4  ;;  %s831_s20 = smov 128   ;;  %s22_s19 = int_to_ptr.vmem [resolvable:$true] %s21_s19 }
   0x3   :  { %s832_s21 = smov 8  }
   0x4   :  { %27 = dma.hbm_to_vmem [thread:$0]  %s20_s17, 1280, %s22_s19, [#allocation3], %s831_s20, %s831_s20, %s832_s21  }
   0x5   :  { %826 = dma.done.wait [#allocation3], 1280  }
   0x6   :  { %827 = vsyncadd [#allocation3], 4294966016  ;;  %vm57_vm0 = vcmask 1043456   ;;  %vm50_vm1 = vcmask 31744   ;;  %v38_v0 = vld [vmem:[#allocation2 + $0x28] sm:$0xff]  ;;  %v37_v1 = vld [vmem:[#allocation2 + $0x20] sm:$0xff] }
   0x7   :  { %v34_v2 = vld [vmem:[#allocation2] sm:$0xf]  ;;  %101 = vmatpush.msra.mxu1 %v38_v0  ;;  %v36_v3 = vld [vmem:[#allocation2 + $0x18] sm:$0xff]  ;;  %173 = vmatpush.msra.mxu2 %v38_v0  ;;  %s833_s27 = smov 32   ;;  %v35_v7 = vld [vmem:[#allocation2 + $0x10] sm:$0xff]  ;;  %s834_s28 = smov 64  }
   0x8   :  { %700 = vmatpush.msk.msra.mxu0 %vm57_vm0, %v34_v2  ;;  %v47_v4 = vld [vmem:[%s964_s0] sm:$0xff]  ;;  %vm85_vm2 = vcmask 261120   ;;  %245 = vmatpush.msra.mxu3 %v38_v0  ;;  %s835_s30 = smov 96   ;;  %s836_s8 = smov [#allocation5]  }
   0x9   :  { %701 = vmatmul.msk.f32.vlgmr.msra.gmra.mxu0 %vm50_vm1, %v47_v4  ;;  %v84_v5 = vld [vmem:[%s965_s1] sm:$0x3]  ;;  %102 = vmatpush.msra.mxu1 %v37_v1  ;;  %s688_s9 = sshll.u32 %s836_s8, 4  ;;  %s690_s12 = sshll.u32 %s968_s4, 4  ;;  %s689_s9 = int_to_ptr.vmem [resolvable:$true] %s688_s9  ;;  %s691_s12 = int_to_ptr.hbm [resolvable:$true] %s690_s12 }
   0xa   :  { %v727_v6 = vld [vmem:[%s967_s3 + $0x1] ss:$0 sm:$0xff]  ;;  %151 = vrot.lane.b32.xlu2 %v84_v5, %s833_s27  ;;  %174 = vmatpush.msra.mxu2 %v37_v1  ;;  %v884_v11 = vld [vmem:[%s967_s3] ss:$0 sm:$0xff] }
   0xb   :  { %130 = vrot.lane.b32.xlu0 %v727_v6, %s834_s28  ;;  %103 = vmatpush.msra.mxu1 %v36_v3 }
   0xc   :  { %175 = vmatpush.msra.mxu2 %v36_v3  ;;  %527 = vmatpush.msrb.mxu0 %v38_v0 }
   0xd   :  { %104 = vmatpush.msra.mxu1 %v35_v7  ;;  %246 = vmatpush.msra.mxu3 %v37_v1 }
   0xe   :  { %703 = vmatmul.msk.f32.vlgmr.msra.gmra.mxu1 %vm85_vm2, %v84_v5  ;;  %176 = vmatpush.msra.mxu2 %v35_v7 }
   0xf   :  { %247 = vmatpush.msra.mxu3 %v36_v3  ;;  %317 = vmatpush.msrb.mxu1 %v38_v0 }
  0x10   :  { %389 = vmatpush.msrb.mxu2 %v38_v0  ;;  %528 = vmatpush.msrb.mxu0 %v37_v1 }
  0x11   :  { %248 = vmatpush.msra.mxu3 %v35_v7  ;;  %318 = vmatpush.msrb.mxu1 %v37_v1 }
  0x12   :  { %390 = vmatpush.msrb.mxu2 %v37_v1  ;;  %529 = vmatpush.msrb.mxu0 %v36_v3 }
  0x13   :  { %455 = vmatpush.msrb.mxu3 %v38_v0  ;;  %319 = vmatpush.msrb.mxu1 %v36_v3 }
  0x14   :  { %391 = vmatpush.msrb.mxu2 %v36_v3  ;;  %530 = vmatpush.msrb.mxu0 %v35_v7 }
  0x15   :  { %456 = vmatpush.msrb.mxu3 %v37_v1  ;;  %320 = vmatpush.msrb.mxu1 %v35_v7 }
  0x16   :  { %392 = vmatpush.msrb.mxu2 %v35_v7 }
  0x17   :  { %457 = vmatpush.msrb.mxu3 %v36_v3  ;;  %599 = vmatpush.msra.mxu1 %v38_v0 }
  0x19   :  { %458 = vmatpush.msrb.mxu3 %v35_v7  ;;  %600 = vmatpush.msra.mxu1 %v37_v1 }
  0x1b   :  { %601 = vmatpush.msra.mxu1 %v36_v3 }
  0x1d   :  { %602 = vmatpush.msra.mxu1 %v35_v7 }
  0x64   :  { %v152_v33 = vpop.permute.xlu2 %151 }
  0x7d   :  { %v877_v8 = vpop.permute.xlu0 %130 }
  0x86   :  { %v78_v12 = vpop.f32.mrf.mxu0 }
  0x87   :  { %v887_v13 = vadd.f32 %v884_v11, %v78_v12 }
  0x8b   :  { %v106_v9 = vpop.f32.mrf.mxu1 }
  0x8c   :  { %v133_v10 = vadd.f32 %v877_v8, %v106_v9  ;;  %v109_v14 = vadd.f32 %v106_v9, %v887_v13 }
  0x8e   :  { %135 = vrot.lane.b32.xlu0 %v133_v10, %s834_s28  ;;  %v704_v15 = vmul.f32 -1.442695, %v109_v14 }
  0x90   :  { %730 = vpow2.f32 %v704_v15 }
  0x96   :  { %v731_v16 = vpop.eup %730 }
  0x97   :  { %v113_v17 = vadd.f32 1.0, %v731_v16 }
  0x99   :  { %732 = vrcp.f32 %v113_v17  ;;  %v125_v23 = vand.u32 2147483648, %v113_v17  ;;  %vm119_vm4 = vweird.f32 %v113_v17  ;;  %v123_v24 = vand.u32 2147483647, %v113_v17 }
  0x9b   :  { %v126_v26 = vor.u32 1.1754944e-38, %v125_v23  ;;  %vm124_vm6 = vcmp.eq.f32.partialorder %v123_v24, 8.507059e+37 }
  0x9f   :  { %v733_v18 = vpop.eup %732 }
  0xa0   :  { %v115_v19 = vmul.f32 %v733_v18, %v113_v17  ;;  %vm120_vm3 = vweird.f32 %v733_v18 }
  0xa1   :  { %vm121_vm5 = vmor %vm119_vm4, %vm120_vm3 }
  0xa2   :  { %v116_v20 = vsub.f32 1.0, %v115_v19 }
  0xa4   :  { %v117_v21 = vmul.f32 %v733_v18, %v116_v20 }
  0xa6   :  { %v118_v22 = vadd.f32 %v733_v18, %v117_v21 }
  0xa8   :  { %v122_v25 = vsel %vm121_vm5, %v733_v18, %v118_v22 }
  0xa9   :  { %v127_v27 = vsel %vm124_vm6, %v126_v26, %v122_v25 }
  0xaa   :  { %v145_v34 = vsub.f32 1.0, %v127_v27  ;;  %v154_v36 = vmul.f32 %v152_v33, %v127_v27 }
 0x100   :  { %v136_v28 = vpop.permute.xlu0 %135 }
 0x101   :  { %v138_v29 = vmul.f32 %v136_v28, %v127_v27 }
 0x103   :  { %140 = vrot.lane.b32.xlu1 %v138_v29, %s834_s28 }
 0x175   :  { %v141_v30 = vpop.permute.xlu1 %140 }
 0x176   :  { %v143_v31 = vadd.f32 %v141_v30, %v887_v13 }
 0x178   :  { %734 = vtanh.f32 %v143_v31 }
 0x17e   :  { %v735_v32 = vpop.eup %734 }
 0x17f   :  { %147 = vrot.lane.b32.xlu1 %v735_v32, %s835_s30 }
 0x1f1   :  { %v148_v35 = vpop.permute.xlu1 %147 }
 0x1f2   :  { %v150_v37 = vmul.f32 %v148_v35, %v145_v34 }
 0x1f4   :  { %v155_v38 = vadd.f32 %v154_v36, %v150_v37 }
 0x1f6   :  { %157 = vrot.lane.b32.xlu2 %v155_v38, %s835_s30  ;;  %v223_v63 = vrot.slane %v155_v38, 6 }
 0x250   :  { %v158_v39 = vpop.permute.xlu2 %157 }
 0x251   :  { %705 = vmatmul.msk.f32.vlgmr.msra.gmra.mxu2 %vm85_vm2, %v158_v39 }
 0x2d4   :  { %v178_v40 = vpop.f32.mrf.mxu2 }
 0x2d5   :  { %v204_v41 = vadd.f32 %v178_v40, %v877_v8  ;;  %v182_v43 = vrot.slane %v178_v40, 6 }
 0x2d7   :  { %v206_v42 = vrot.slane %v204_v41, 6  ;;  %v184_v44 = vadd.f32 %v182_v43, %v887_v13 }
 0x2d9   :  { %207 = vrot.lane.b32.xlu0 %v206_v42, %s834_s28  ;;  %v706_v45 = vmul.f32 -1.442695, %v184_v44 }
 0x2db   :  { %736 = vpow2.f32 %v706_v45 }
 0x2e1   :  { %v737_v46 = vpop.eup %736 }
 0x2e2   :  { %v188_v47 = vadd.f32 1.0, %v737_v46 }
 0x2e4   :  { %738 = vrcp.f32 %v188_v47  ;;  %v200_v53 = vand.u32 2147483648, %v188_v47  ;;  %vm194_vm8 = vweird.f32 %v188_v47  ;;  %v198_v54 = vand.u32 2147483647, %v188_v47 }
 0x2e6   :  { %v201_v56 = vor.u32 1.1754944e-38, %v200_v53  ;;  %vm199_vm10 = vcmp.eq.f32.partialorder %v198_v54, 8.507059e+37 }
 0x2ea   :  { %v739_v48 = vpop.eup %738 }
 0x2eb   :  { %v190_v49 = vmul.f32 %v739_v48, %v188_v47  ;;  %vm195_vm7 = vweird.f32 %v739_v48 }
 0x2ec   :  { %vm196_vm9 = vmor %vm194_vm8, %vm195_vm7 }
 0x2ed   :  { %v191_v50 = vsub.f32 1.0, %v190_v49 }
 0x2ef   :  { %v192_v51 = vmul.f32 %v739_v48, %v191_v50 }
 0x2f1   :  { %v193_v52 = vadd.f32 %v739_v48, %v192_v51 }
 0x2f3   :  { %v197_v55 = vsel %vm196_vm9, %v739_v48, %v193_v52 }
 0x2f4   :  { %v202_v58 = vsel %vm199_vm10, %v201_v56, %v197_v55 }
 0x2f5   :  { %v217_v0 = vsub.f32 1.0, %v202_v58  ;;  %v225_v3 = vmul.f32 %v223_v63, %v202_v58 }
 0x34b   :  { %v208_v57 = vpop.permute.xlu0 %207 }
 0x34c   :  { %v210_v59 = vmul.f32 %v208_v57, %v202_v58 }
 0x34e   :  { %212 = vrot.lane.b32.xlu1 %v210_v59, %s834_s28 }
 0x3c0   :  { %v213_v60 = vpop.permute.xlu1 %212 }
 0x3c1   :  { %v215_v61 = vadd.f32 %v213_v60, %v887_v13 }
 0x3c3   :  { %740 = vtanh.f32 %v215_v61 }
 0x3c9   :  { %v741_v62 = vpop.eup %740 }
 0x3ca   :  { %219 = vrot.lane.b32.xlu2 %v741_v62, %s835_s30 }
 0x424   :  { %v220_v1 = vpop.permute.xlu2 %219 }
 0x425   :  { %v222_v2 = vmul.f32 %v220_v1, %v217_v0 }
 0x427   :  { %v226_v4 = vadd.f32 %v225_v3, %v222_v2 }
 0x429   :  { %v228_v5 = vrot.slane %v226_v4, 2  ;;  %v295_v33 = vrot.slane %v226_v4, 6 }
 0x42b   :  { %229 = vrot.lane.b32.xlu0 %v228_v5, %s835_s30 }
 0x49d   :  { %v230_v6 = vpop.permute.xlu0 %229 }
 0x49e   :  { %707 = vmatmul.msk.f32.vlgmr.msra.gmra.mxu3 %vm85_vm2, %v230_v6 }
 0x521   :  { %v250_v7 = vpop.f32.mrf.mxu3 }
 0x522   :  { %v276_v9 = vadd.f32 %v250_v7, %v877_v8  ;;  %v254_v12 = vrot.slane %v250_v7, 4  ;;  %v48_v7 = vld [vmem:[%s964_s0 + $0x8] sm:$0xff] }
 0x523   :  { %702 = vmatmul.msk.f32.gmra.mxu0 %vm50_vm1, %v48_v7 }
 0x524   :  { %v278_v10 = vrot.slane %v276_v9, 4  ;;  %v256_v14 = vadd.f32 %v254_v12, %v887_v13 }
 0x526   :  { %279 = vrot.lane.b32.xlu1 %v278_v10, %s834_s28  ;;  %v708_v15 = vmul.f32 -1.442695, %v256_v14 }
 0x528   :  { %742 = vpow2.f32 %v708_v15 }
 0x52e   :  { %v743_v16 = vpop.eup %742 }
 0x52f   :  { %v260_v17 = vadd.f32 1.0, %v743_v16 }
 0x531   :  { %744 = vrcp.f32 %v260_v17  ;;  %v272_v23 = vand.u32 2147483648, %v260_v17  ;;  %vm266_vm12 = vweird.f32 %v260_v17  ;;  %v270_v24 = vand.u32 2147483647, %v260_v17 }
 0x533   :  { %v273_v26 = vor.u32 1.1754944e-38, %v272_v23  ;;  %vm271_vm14 = vcmp.eq.f32.partialorder %v270_v24, 8.507059e+37 }
 0x537   :  { %v745_v18 = vpop.eup %744 }
 0x538   :  { %v262_v19 = vmul.f32 %v745_v18, %v260_v17  ;;  %vm267_vm11 = vweird.f32 %v745_v18 }
 0x539   :  { %vm268_vm13 = vmor %vm266_vm12, %vm267_vm11 }
 0x53a   :  { %v263_v20 = vsub.f32 1.0, %v262_v19 }
 0x53c   :  { %v264_v21 = vmul.f32 %v745_v18, %v263_v20 }
 0x53e   :  { %v265_v22 = vadd.f32 %v745_v18, %v264_v21 }
 0x540   :  { %v269_v25 = vsel %vm268_vm13, %v745_v18, %v265_v22 }
 0x541   :  { %v274_v28 = vsel %vm271_vm14, %v273_v26, %v269_v25 }
 0x542   :  { %v289_v34 = vsub.f32 1.0, %v274_v28  ;;  %v297_v36 = vmul.f32 %v295_v33, %v274_v28 }
 0x598   :  { %v280_v27 = vpop.permute.xlu1 %279 }
 0x599   :  { %v282_v29 = vmul.f32 %v280_v27, %v274_v28 }
 0x59b   :  { %284 = vrot.lane.b32.xlu2 %v282_v29, %s834_s28 }
 0x5a0   :  { %v81_v12 = vpop.f32.mrf.mxu0 }
 0x5a1   :  { %v926_v14 = vadd.f32 %v884_v11, %v81_v12 }
 0x5f5   :  { %v285_v30 = vpop.permute.xlu2 %284 }
 0x5f6   :  { %v287_v31 = vadd.f32 %v285_v30, %v887_v13 }
 0x5f8   :  { %746 = vtanh.f32 %v287_v31 }
 0x5fe   :  { %v747_v32 = vpop.eup %746 }
 0x5ff   :  { %291 = vrot.lane.b32.xlu0 %v747_v32, %s835_s30 }
 0x671   :  { %v292_v35 = vpop.permute.xlu0 %291 }
 0x672   :  { %v294_v37 = vmul.f32 %v292_v35, %v289_v34 }
 0x674   :  { %v298_v38 = vadd.f32 %v297_v36, %v294_v37 }
 0x676   :  { %v300_v39 = vrot.slane %v298_v38, 4  ;;  %v367_v57 = vrot.slane %v298_v38, 6 }
 0x678   :  { %301 = vrot.lane.b32.xlu1 %v300_v39, %s835_s30 }
 0x6ea   :  { %v302_v40 = vpop.permute.xlu1 %301 }
 0x6eb   :  { %709 = vmatmul.msk.f32.vlgmr.msrb.gmra.mxu1 %vm85_vm2, %v302_v40 }
 0x768   :  { %v322_v41 = vpop.f32.mrf.mxu1 }
 0x769   :  { %v326_v42 = vrot.slane %v322_v41, 2  ;;  %v348_v43 = vadd.f32 %v322_v41, %v877_v8 }
 0x76b   :  { %v328_v44 = vadd.f32 %v326_v42, %v887_v13  ;;  %v350_v45 = vrot.slane %v348_v43, 2 }
 0x76d   :  { %v710_v46 = vmul.f32 -1.442695, %v328_v44  ;;  %351 = vrot.lane.b32.xlu2 %v350_v45, %s834_s28 }
 0x76f   :  { %748 = vpow2.f32 %v710_v46 }
 0x775   :  { %v749_v47 = vpop.eup %748 }
 0x776   :  { %v332_v48 = vadd.f32 1.0, %v749_v47 }
 0x778   :  { %750 = vrcp.f32 %v332_v48  ;;  %v344_v52 = vand.u32 2147483648, %v332_v48  ;;  %v342_v54 = vand.u32 2147483647, %v332_v48  ;;  %vm338_vm0 = vweird.f32 %v332_v48 }
 0x77a   :  { %v345_v56 = vor.u32 1.1754944e-38, %v344_v52  ;;  %vm343_vm4 = vcmp.eq.f32.partialorder %v342_v54, 8.507059e+37 }
 0x77e   :  { %v751_v49 = vpop.eup %750 }
 0x77f   :  { %v334_v50 = vmul.f32 %v751_v49, %v332_v48  ;;  %vm339_vm15 = vweird.f32 %v751_v49 }
 0x780   :  { %vm340_vm3 = vmor %vm338_vm0, %vm339_vm15 }
 0x781   :  { %v335_v51 = vsub.f32 1.0, %v334_v50 }
 0x783   :  { %v336_v53 = vmul.f32 %v751_v49, %v335_v51 }
 0x785   :  { %v337_v55 = vadd.f32 %v751_v49, %v336_v53 }
 0x787   :  { %v341_v58 = vsel %vm340_vm3, %v751_v49, %v337_v55 }
 0x788   :  { %v346_v59 = vsel %vm343_vm4, %v345_v56, %v341_v58 }
 0x789   :  { %v369_v60 = vmul.f32 %v367_v57, %v346_v59  ;;  %v361_v2 = vsub.f32 1.0, %v346_v59 }
 0x7c7   :  { %v352_v61 = vpop.permute.xlu2 %351 }
 0x7c8   :  { %v354_v62 = vmul.f32 %v352_v61, %v346_v59 }
 0x7ca   :  { %356 = vrot.lane.b32.xlu0 %v354_v62, %s834_s28 }
 0x83c   :  { %v357_v63 = vpop.permute.xlu0 %356 }
 0x83d   :  { %v359_v0 = vadd.f32 %v357_v63, %v887_v13 }
 0x83f   :  { %752 = vtanh.f32 %v359_v0 }
 0x845   :  { %v753_v1 = vpop.eup %752 }
 0x846   :  { %363 = vrot.lane.b32.xlu1 %v753_v1, %s835_s30 }
 0x8b8   :  { %v364_v3 = vpop.permute.xlu1 %363 }
 0x8b9   :  { %v366_v4 = vmul.f32 %v364_v3, %v361_v2 }
 0x8bb   :  { %v370_v5 = vadd.f32 %v369_v60, %v366_v4 }
 0x8bd   :  { %v372_v6 = vrot.slane %v370_v5, 6 }
 0x8bf   :  { %373 = vrot.lane.b32.xlu2 %v372_v6, %s835_s30 }
 0x919   :  { %v374_v9 = vpop.permute.xlu2 %373 }
 0x91a   :  { %711 = vmatmul.msk.f32.vlgmr.msrb.gmra.mxu2 %vm85_vm2, %v374_v9 }
 0x99d   :  { %v394_v13 = vpop.f32.mrf.mxu2 }
 0x99e   :  { %v417_v10 = vadd.f32 %v394_v13, %v877_v8  ;;  %v397_v15 = vadd.f32 %v394_v13, %v926_v14 }
 0x9a0   :  { %419 = vrot.lane.b32.xlu0 %v417_v10, %s834_s28  ;;  %v712_v16 = vmul.f32 -1.442695, %v397_v15 }
 0x9a2   :  { %754 = vpow2.f32 %v712_v16 }
 0x9a8   :  { %v755_v17 = vpop.eup %754 }
 0x9a9   :  { %v401_v18 = vadd.f32 1.0, %v755_v17 }
 0x9ab   :  { %756 = vrcp.f32 %v401_v18  ;;  %v413_v24 = vand.u32 2147483648, %v401_v18  ;;  %vm407_vm5 = vweird.f32 %v401_v18  ;;  %v411_v25 = vand.u32 2147483647, %v401_v18 }
 0x9ad   :  { %v414_v11 = vor.u32 1.1754944e-38, %v413_v24  ;;  %vm412_vm7 = vcmp.eq.f32.partialorder %v411_v25, 8.507059e+37 }
 0x9b1   :  { %v757_v19 = vpop.eup %756 }
 0x9b2   :  { %v403_v20 = vmul.f32 %v757_v19, %v401_v18  ;;  %vm408_vm1 = vweird.f32 %v757_v19 }
 0x9b3   :  { %vm409_vm6 = vmor %vm407_vm5, %vm408_vm1  ;;  %vm681_vm5 = vcmask 25600  }
 0x9b4   :  { %v404_v21 = vsub.f32 1.0, %v403_v20 }
 0x9b6   :  { %v405_v22 = vmul.f32 %v757_v19, %v404_v21 }
 0x9b8   :  { %v406_v23 = vadd.f32 %v757_v19, %v405_v22 }
 0x9ba   :  { %v410_v26 = vsel %vm409_vm6, %v757_v19, %v406_v23 }
 0x9bb   :  { %v415_v28 = vsel %vm412_vm7, %v414_v11, %v410_v26 }
 0x9bc   :  { %v429_v33 = vsub.f32 1.0, %v415_v28  ;;  %v436_v35 = vmul.f32 %v415_v28, %v372_v6 }
 0xa12   :  { %v420_v27 = vpop.permute.xlu0 %419 }
 0xa13   :  { %v422_v29 = vmul.f32 %v420_v27, %v415_v28 }
 0xa15   :  { %424 = vrot.lane.b32.xlu1 %v422_v29, %s834_s28 }
 0xa87   :  { %v425_v30 = vpop.permute.xlu1 %424 }
 0xa88   :  { %v427_v31 = vadd.f32 %v425_v30, %v926_v14 }
 0xa8a   :  { %758 = vtanh.f32 %v427_v31 }
 0xa90   :  { %v759_v32 = vpop.eup %758 }
 0xa91   :  { %431 = vrot.lane.b32.xlu2 %v759_v32, %s835_s30 }
 0xaeb   :  { %v432_v34 = vpop.permute.xlu2 %431 }
 0xaec   :  { %v434_v36 = vmul.f32 %v432_v34, %v429_v33 }
 0xaee   :  { %v437_v37 = vadd.f32 %v436_v35, %v434_v36 }
 0xaf0   :  { %439 = vrot.lane.b32.xlu0 %v437_v37, %s835_s30  ;;  %v505_v62 = vrot.slane %v437_v37, 6 }
 0xb62   :  { %v440_v38 = vpop.permute.xlu0 %439 }
 0xb63   :  { %713 = vmatmul.msk.f32.vlgmr.msrb.gmra.mxu3 %vm85_vm2, %v440_v38 }
 0xbe6   :  { %v460_v39 = vpop.f32.mrf.mxu3 }
 0xbe7   :  { %v486_v40 = vadd.f32 %v460_v39, %v877_v8  ;;  %v464_v42 = vrot.slane %v460_v39, 6 }
 0xbe9   :  { %v488_v41 = vrot.slane %v486_v40, 6  ;;  %v466_v43 = vadd.f32 %v464_v42, %v926_v14 }
 0xbeb   :  { %489 = vrot.lane.b32.xlu1 %v488_v41, %s834_s28  ;;  %v714_v44 = vmul.f32 -1.442695, %v466_v43 }
 0xbed   :  { %760 = vpow2.f32 %v714_v44 }
 0xbf3   :  { %v761_v45 = vpop.eup %760 }
 0xbf4   :  { %v470_v46 = vadd.f32 1.0, %v761_v45 }
 0xbf6   :  { %762 = vrcp.f32 %v470_v46  ;;  %v482_v52 = vand.u32 2147483648, %v470_v46  ;;  %vm476_vm9 = vweird.f32 %v470_v46  ;;  %v480_v53 = vand.u32 2147483647, %v470_v46 }
 0xbf8   :  { %v483_v55 = vor.u32 1.1754944e-38, %v482_v52  ;;  %vm481_vm11 = vcmp.eq.f32.partialorder %v480_v53, 8.507059e+37 }
 0xbfc   :  { %v763_v47 = vpop.eup %762 }
 0xbfd   :  { %v472_v48 = vmul.f32 %v763_v47, %v470_v46  ;;  %vm477_vm8 = vweird.f32 %v763_v47 }
 0xbfe   :  { %vm478_vm10 = vmor %vm476_vm9, %vm477_vm8 }
 0xbff   :  { %v473_v49 = vsub.f32 1.0, %v472_v48 }
 0xc01   :  { %v474_v50 = vmul.f32 %v763_v47, %v473_v49 }
 0xc03   :  { %v475_v51 = vadd.f32 %v763_v47, %v474_v50 }
 0xc05   :  { %v479_v54 = vsel %vm478_vm10, %v763_v47, %v475_v51 }
 0xc06   :  { %v484_v57 = vsel %vm481_vm11, %v483_v55, %v479_v54 }
 0xc07   :  { %v499_v63 = vsub.f32 1.0, %v484_v57  ;;  %v507_v2 = vmul.f32 %v505_v62, %v484_v57  ;;  %v41_v62 = vld [vmem:[#allocation2 + $0x40] sm:$0xff] }
 0xc5d   :  { %v490_v56 = vpop.permute.xlu1 %489 }
 0xc5e   :  { %v492_v58 = vmul.f32 %v490_v56, %v484_v57 }
 0xc60   :  { %494 = vrot.lane.b32.xlu2 %v492_v58, %s834_s28 }
 0xcba   :  { %v495_v59 = vpop.permute.xlu2 %494 }
 0xcbb   :  { %v497_v60 = vadd.f32 %v495_v59, %v926_v14 }
 0xcbd   :  { %764 = vtanh.f32 %v497_v60 }
 0xcc3   :  { %v765_v61 = vpop.eup %764 }
 0xcc4   :  { %501 = vrot.lane.b32.xlu0 %v765_v61, %s835_s30  ;;  %v42_v61 = vld [vmem:[#allocation2 + $0x48] sm:$0xff] }
 0xcc5   :  { %671 = vmatpush.msra.mxu2 %v42_v61 }
 0xcc7   :  { %672 = vmatpush.msra.mxu2 %v41_v62 }
 0xd36   :  { %v502_v0 = vpop.permute.xlu0 %501 }
 0xd37   :  { %v504_v1 = vmul.f32 %v502_v0, %v499_v63  ;;  %v40_v63 = vld [vmem:[#allocation2 + $0x38] sm:$0xff]  ;;  %v39_v0 = vld [vmem:[#allocation2 + $0x30] sm:$0xff] }
 0xd38   :  { %673 = vmatpush.msra.mxu2 %v40_v63 }
 0xd39   :  { %v508_v3 = vadd.f32 %v507_v2, %v504_v1 }
 0xd3a   :  { %674 = vmatpush.msra.mxu2 %v39_v0 }
 0xd3b   :  { %v510_v4 = vrot.slane %v508_v3, 2  ;;  %v577_v25 = vrot.slane %v508_v3, 6 }
 0xd3d   :  { %511 = vrot.lane.b32.xlu1 %v510_v4, %s835_s30 }
 0xdaf   :  { %v512_v5 = vpop.permute.xlu1 %511 }
 0xdb0   :  { %715 = vmatmul.msk.f32.vlgmr.msrb.gmra.mxu0 %vm85_vm2, %v512_v5 }
 0xe2d   :  { %v532_v6 = vpop.f32.mrf.mxu0 }
 0xe2e   :  { %v536_v7 = vrot.slane %v532_v6, 4  ;;  %v558_v9 = vadd.f32 %v532_v6, %v877_v8 }
 0xe30   :  { %v538_v13 = vadd.f32 %v536_v7, %v926_v14  ;;  %v560_v10 = vrot.slane %v558_v9, 4  ;;  %v729_v9 = vld [vmem:[%s967_s3 + $0x2] ss:$0 sm:$0xff] }
 0xe32   :  { %v716_v12 = vmul.f32 -1.442695, %v538_v13  ;;  %561 = vrot.lane.b32.xlu2 %v560_v10, %s834_s28 }
 0xe34   :  { %766 = vpow2.f32 %v716_v12 }
 0xe3a   :  { %v767_v15 = vpop.eup %766 }
 0xe3b   :  { %v542_v16 = vadd.f32 1.0, %v767_v15 }
 0xe3d   :  { %768 = vrcp.f32 %v542_v16  ;;  %v554_v20 = vand.u32 2147483648, %v542_v16  ;;  %v552_v22 = vand.u32 2147483647, %v542_v16  ;;  %vm548_vm13 = vweird.f32 %v542_v16 }
 0xe3f   :  { %v555_v24 = vor.u32 1.1754944e-38, %v554_v20  ;;  %vm553_vm15 = vcmp.eq.f32.partialorder %v552_v22, 8.507059e+37 }
 0xe43   :  { %v769_v17 = vpop.eup %768 }
 0xe44   :  { %v544_v18 = vmul.f32 %v769_v17, %v542_v16  ;;  %vm549_vm12 = vweird.f32 %v769_v17 }
 0xe45   :  { %vm550_vm14 = vmor %vm548_vm13, %vm549_vm12 }
 0xe46   :  { %v545_v19 = vsub.f32 1.0, %v544_v18 }
 0xe48   :  { %v546_v21 = vmul.f32 %v769_v17, %v545_v19 }
 0xe4a   :  { %v547_v23 = vadd.f32 %v769_v17, %v546_v21 }
 0xe4c   :  { %v551_v26 = vsel %vm550_vm14, %v769_v17, %v547_v23 }
 0xe4d   :  { %v556_v11 = vsel %vm553_vm15, %v555_v24, %v551_v26 }
 0xe4e   :  { %v579_v27 = vmul.f32 %v577_v25, %v556_v11  ;;  %v571_v33 = vsub.f32 1.0, %v556_v11 }
 0xe8c   :  { %v562_v28 = vpop.permute.xlu2 %561 }
 0xe8d   :  { %v564_v29 = vmul.f32 %v562_v28, %v556_v11 }
 0xe8f   :  { %566 = vrot.lane.b32.xlu0 %v564_v29, %s834_s28 }
 0xf01   :  { %v567_v30 = vpop.permute.xlu0 %566 }
 0xf02   :  { %v569_v31 = vadd.f32 %v567_v30, %v926_v14 }
 0xf04   :  { %770 = vtanh.f32 %v569_v31 }
 0xf0a   :  { %v771_v32 = vpop.eup %770 }
 0xf0b   :  { %573 = vrot.lane.b32.xlu1 %v771_v32, %s835_s30 }
 0xf7d   :  { %v574_v34 = vpop.permute.xlu1 %573 }
 0xf7e   :  { %v576_v35 = vmul.f32 %v574_v34, %v571_v33 }
 0xf80   :  { %v580_v36 = vadd.f32 %v579_v27, %v576_v35 }
 0xf82   :  { %v582_v37 = vrot.slane %v580_v36, 4  ;;  %v649_v1 = vrot.slane %v580_v36, 6 }
 0xf84   :  { %583 = vrot.lane.b32.xlu2 %v582_v37, %s835_s30 }
 0xfde   :  { %v584_v38 = vpop.permute.xlu2 %583 }
 0xfdf   :  { %717 = vmatmul.msk.f32.vlgmr.msra.gmra.mxu1 %vm85_vm2, %v584_v38 }
0x105c   :  { %v604_v39 = vpop.f32.mrf.mxu1 }
0x105d   :  { %v630_v40 = vadd.f32 %v604_v39, %v877_v8  ;;  %v608_v42 = vrot.slane %v604_v39, 2 }
0x105f   :  { %v632_v41 = vrot.slane %v630_v40, 2  ;;  %v610_v43 = vadd.f32 %v608_v42, %v926_v14 }
0x1061   :  { %633 = vrot.lane.b32.xlu0 %v632_v41, %s834_s28  ;;  %v718_v44 = vmul.f32 -1.442695, %v610_v43 }
0x1063   :  { %772 = vpow2.f32 %v718_v44 }
0x1069   :  { %v773_v45 = vpop.eup %772 }
0x106a   :  { %v614_v46 = vadd.f32 1.0, %v773_v45 }
0x106c   :  { %774 = vrcp.f32 %v614_v46  ;;  %v626_v52 = vand.u32 2147483648, %v614_v46  ;;  %vm620_vm3 = vweird.f32 %v614_v46  ;;  %v624_v8 = vand.u32 2147483647, %v614_v46 }
0x106e   :  { %v627_v54 = vor.u32 1.1754944e-38, %v626_v52  ;;  %vm625_vm1 = vcmp.eq.f32.partialorder %v624_v8, 8.507059e+37 }
0x1072   :  { %v775_v47 = vpop.eup %774 }
0x1073   :  { %v616_v48 = vmul.f32 %v775_v47, %v614_v46  ;;  %vm621_vm0 = vweird.f32 %v775_v47 }
0x1074   :  { %vm622_vm4 = vmor %vm620_vm3, %vm621_vm0 }
0x1075   :  { %v617_v49 = vsub.f32 1.0, %v616_v48 }
0x1077   :  { %v618_v50 = vmul.f32 %v775_v47, %v617_v49 }
0x1079   :  { %v619_v51 = vadd.f32 %v775_v47, %v618_v50 }
0x107b   :  { %v623_v53 = vsel %vm622_vm4, %v775_v47, %v619_v51 }
0x107c   :  { %v628_v56 = vsel %vm625_vm1, %v627_v54, %v623_v53 }
0x107d   :  { %v643_v2 = vsub.f32 1.0, %v628_v56  ;;  %v651_v4 = vmul.f32 %v649_v1, %v628_v56 }
0x10d3   :  { %v634_v55 = vpop.permute.xlu0 %633 }
0x10d4   :  { %v636_v57 = vmul.f32 %v634_v55, %v628_v56 }
0x10d6   :  { %638 = vrot.lane.b32.xlu1 %v636_v57, %s834_s28 }
0x1148   :  { %v639_v58 = vpop.permute.xlu1 %638 }
0x1149   :  { %v641_v59 = vadd.f32 %v639_v58, %v926_v14 }
0x114b   :  { %776 = vtanh.f32 %v641_v59 }
0x1151   :  { %v777_v60 = vpop.eup %776 }
0x1152   :  { %645 = vrot.lane.b32.xlu2 %v777_v60, %s835_s30 }
0x11ac   :  { %v646_v3 = vpop.permute.xlu2 %645 }
0x11ad   :  { %v648_v5 = vmul.f32 %v646_v3, %v643_v2 }
0x11af   :  { %v652_v6 = vadd.f32 %v651_v4, %v648_v5 }
0x11b1   :  { %v654_v7 = vrot.slane %v652_v6, 6 }
0x11b3   :  { %655 = vrot.lane.b32.xlu0 %v654_v7, %s835_s30 }
0x1225   :  { %v656_v14 = vpop.permute.xlu0 %655 }
0x1226   :  { %719 = vmatmul.msk.f32.vlgmr.msra.gmra.mxu2 %vm85_vm2, %v656_v14 }
0x12a9   :  { %v676_v13 = vpop.f32.mrf.mxu2 }
0x12aa   :  { %v680_v10 = vadd.f32 %v729_v9, %v676_v13 }
0x12ac   :  { %682 = vst.msk [vmem:[#allocation5] sm:$0x3] %vm681_vm5, %v680_v10 }
0x12ad   :  { %693 = dma.vmem_to_hbm [thread:$0]  %s689_s9, 32, %s691_s12, [#allocation4]  }
0x12ae   :  { %828 = dma.done.wait [#allocation4], 32  }
0x12af   :  { %829 = vsyncadd [#allocation4], 4294967264 }
0x12b0   :  { %698 = vsyncpa [#allocation3], 1 }
0x12b1   :  { %699 = vsyncpa [#allocation4], 1 }

</bundles_post_ra>
